<compile_context>
chip_gen: v5e
topology: v5e:2x2
jax: 0.10.0
libtpu: 0.0.40
codegen_flags: <defaults>
</compile_context>

<pallas_src>
import functools

import jax
import jax.numpy as jnp
from jax.experimental import pallas as pl
from jax.experimental.pallas import tpu as pltpu

BN_EPS = 1e-5
FEAT = 64        # hidden feature channels of the generator
OUT_PAD = 128    # lane-dense padding of the final conv's output channels


# ----------------------------------------------------------------------------
# Pallas kernels
# ----------------------------------------------------------------------------
def linear_kernel(z_ref, w_ref, b_ref, o_ref):
    # z: [N, latent], w: [latent, out] (columns pre-permuted to NHWC order), b: [1, out]
    o_ref[...] = (
        jnp.dot(z_ref[...], w_ref[...], preferred_element_type=jnp.float32)
        + b_ref[...]
    )


def generator_kernel(img_ref, noise_ref,
                     l1_w_ref, l1_s_ref, l1_t_ref,
                     res_w_ref, res_s_ref, res_t_ref,
                     l2_w_ref, l2_s_ref, l2_t_ref,
                     out_ref, *, H, W, n_blocks):
    """Fused l1 -> residual blocks -> l2 for one image (grid over batch)."""
    M = H * W

    # Per-pixel (row, col) indices of the flattened feature map (2-D iota on TPU).
    m_idx = jax.lax.broadcasted_iota(jnp.int32, (M, 1), 0)
    x_idx = m_idx % W
    y_idx = m_idx // W

    # Boundary-validity masks for the 9 conv taps (shared by every conv layer).
    offsets = [(dy, dx) for dy in (-1, 0, 1) for dx in (-1, 0, 1)]
    masks = {}
    for dy, dx in offsets:
        masks[(dy, dx)] = ((x_idx + dx >= 0) & (x_idx + dx < W)
                           & (y_idx + dy >= 0) & (y_idx + dy < H))

    def taps(x):
        """x: [M, Cin] f32 -> [M, 9*Cin] bf16 im2col taps (merged contraction K)."""
        pieces = []
        for dy, dx in offsets:
            s = dy * W + dx
            if s == 0:
                pieces.append(x)
            else:
                shifted = pltpu.roll(x, shift=(-s) % M, axis=0)  # out[m] = x[m + s]
                pieces.append(jnp.where(masks[(dy, dx)], shifted, 0.0))
        return jnp.concatenate(pieces, axis=-1).astype(jnp.bfloat16)

    def conv(x, w_bf16, scale, shift, act):
        """3x3 conv (stride 1, pad 1) + folded bias/BN + activation, one MXU dot."""
        y = jnp.dot(taps(x), w_bf16, preferred_element_type=jnp.float32)
        y = y * scale + shift
        if act == "relu":
            y = jnp.maximum(y, 0.0)
        elif act == "tanh":
            y = jnp.tanh(y)
        return y

    # gen_input = cat((img, fc(z)), channel) -- both already NHWC-flat [M, C]
    x = jnp.concatenate([img_ref[0], noise_ref[0]], axis=-1)

    # l1: conv + ReLU (no BN)
    out = conv(x, l1_w_ref[...], l1_s_ref[...], l1_t_ref[...], "relu")

    # residual blocks: out = out + BN(conv(ReLU(BN(conv(out)))))   (BN folded, eval)
    for b in range(n_blocks):
        h1 = conv(out, res_w_ref[2 * b], res_s_ref[2 * b], res_t_ref[2 * b], "relu")
        h2 = conv(h1, res_w_ref[2 * b + 1], res_s_ref[2 * b + 1],
                  res_t_ref[2 * b + 1], "none")
        out = out + h2

    # l2: conv + Tanh (no BN); output channels zero-padded to OUT_PAD for lane-dense stores
    out_ref[0] = conv(out, l2_w_ref[...], l2_s_ref[...], l2_t_ref[...], "tanh")


# ----------------------------------------------------------------------------
# Wrappers around pallas_call
# ----------------------------------------------------------------------------
def _full_spec(arr):
    nd = arr.ndim
    return pl.BlockSpec(arr.shape, lambda *_, _nd=nd: (0,) * _nd)


def fc_linear(z, w, b):
    n = z.shape[0]
    d = w.shape[1]
    return pl.pallas_call(
        linear_kernel,
        out_shape=jax.ShapeDtypeStruct((n, d), jnp.float32),
        in_specs=[_full_spec(z), _full_spec(w), _full_spec(b)],
        out_specs=pl.BlockSpec((n, d), lambda *_: (0, 0)),
    )(z, w, b)


def fused_generator(img_flat, noise_flat, p, *, H, W, n_blocks):
    N, M, _ = img_flat.shape
    kernel = functools.partial(generator_kernel, H=H, W=W, n_blocks=n_blocks)

    def per_image(arr):
        nd = arr.ndim
        return pl.BlockSpec((1,) + arr.shape[1:],
                            lambda n, _nd=nd: (n,) + (0,) * (_nd - 1))

    weights = [p["l1_w"], p["l1_scale"], p["l1_shift"],
               p["res_w"], p["res_scale"], p["res_shift"],
               p["l2_w"], p["l2_scale"], p["l2_shift"]]

    return pl.pallas_call(
        kernel,
        out_shape=jax.ShapeDtypeStruct((N, M, OUT_PAD), jnp.float32),
        grid=(N,),
        in_specs=[per_image(img_flat), per_image(noise_flat)]
                 + [_full_spec(a) for a in weights],
        out_specs=pl.BlockSpec((1, M, OUT_PAD), lambda n: (n, 0, 0)),
        compiler_params=pltpu.CompilerParams(
            dimension_semantics=("parallel",),        # 2 TCs on v7x; no-op on v5e/v6e
            vmem_limit_bytes=32 * 1024 * 1024),
    )(img_flat, noise_flat, *weights)


# ----------------------------------------------------------------------------
# Parameters (deterministic synthetic init, PyTorch layouts -> MXU layouts)
# ----------------------------------------------------------------------------
def _randn(key, shape, scale=0.1):
    return scale * jax.random.normal(key, shape, dtype=jnp.float32)


def _fold_bn(gamma, beta, mean, var, conv_bias):
    scale = gamma / jnp.sqrt(var + BN_EPS)
    shift = beta - mean * scale + conv_bias * scale
    return scale.reshape(1, -1), shift.reshape(1, -1)


def _conv_w_to_mxu(w_oihw, cout_pad=None):
    """PyTorch [Cout, Cin, 3, 3] -> [9*Cin, Cout(_pad)] bf16, K ordered (kh, kw, cin)."""
    cout, cin = w_oihw.shape[:2]
    w = jnp.transpose(w_oihw, (2, 3, 1, 0)).reshape(9 * cin, cout)
    if cout_pad is not None and cout_pad > cout:
        w = jnp.pad(w, ((0, 0), (0, cout_pad - cout)))
    return w.astype(jnp.bfloat16)


def init_params(key, channels, img_size, latent_dim, n_residual_blocks):
    assert n_residual_blocks >= 1
    keys = iter(jax.random.split(key, 8 + 12 * n_residual_blocks))
    M = img_size * img_size
    p = {"n_blocks": n_residual_blocks}

    # fc: Linear(latent_dim -> C*H*W); PyTorch .view(N, C, H, W) implies (c, y, x)
    # column order. Permute columns once so the kernel output is NHWC-flat directly.
    fc_w = _randn(next(keys), (latent_dim, channels * M))
    fc_b = _randn(next(keys), (1, channels * M))
    k = jnp.arange(channels * M)
    perm = (k % channels) * M + (k // channels)
    p["fc_w"] = fc_w[:, perm]
    p["fc_b"] = fc_b[:, perm]

    # l1: Conv2d(2C -> 64, 3, 1, 1) + ReLU (no BN)
    w = _randn(next(keys), (FEAT, 2 * channels, 3, 3))
    b = _randn(next(keys), (FEAT,))
    p["l1_w"] = _conv_w_to_mxu(w)
    p["l1_scale"] = jnp.ones((1, FEAT), jnp.float32)
    p["l1_shift"] = b.reshape(1, FEAT)

    # residual blocks: Conv-BN-ReLU-Conv-BN, skip add (BN folded, eval mode)
    rw, rs, rt = [], [], []
    for _ in range(n_residual_blocks):
        for _i in range(2):
            w = _randn(next(keys), (FEAT, FEAT, 3, 3))
            b = _randn(next(keys), (FEAT,))
            gamma = 1.0 + _randn(next(keys), (FEAT,))
            beta = _randn(next(keys), (FEAT,))
            mean = _randn(next(keys), (FEAT,))
            var = 1.0 + jnp.abs(_randn(next(keys), (FEAT,)))
            scale, shift = _fold_bn(gamma, beta, mean, var, b)
            rw.append(_conv_w_to_mxu(w))
            rs.append(scale)
            rt.append(shift)
    p["res_w"] = jnp.stack(rw)        # [2*nb, 9*64, 64] bf16
    p["res_scale"] = jnp.stack(rs)    # [2*nb, 1, 64] f32
    p["res_shift"] = jnp.stack(rt)    # [2*nb, 1, 64] f32

    # l2: Conv2d(64 -> C, 3, 1, 1) + Tanh (no BN); pad Cout to OUT_PAD (lane-dense)
    w = _randn(next(keys), (channels, FEAT, 3, 3))
    b = _randn(next(keys), (channels,))
    p["l2_w"] = _conv_w_to_mxu(w, cout_pad=OUT_PAD)
    p["l2_scale"] = jnp.ones((1, OUT_PAD), jnp.float32)
    p["l2_shift"] = jnp.pad(b.reshape(1, channels),
                            ((0, 0), (0, OUT_PAD - channels)))
    return p


# ----------------------------------------------------------------------------
# Generator forward (matches PyTorch Generator.forward semantics, eval-mode BN)
# ----------------------------------------------------------------------------
def generator_forward(img_nchw, z, params):
    n, c, h, w = img_nchw.shape
    m = h * w

    # fc(z) -> NHWC-flat noise; the reshape below is a free row-major view.
    noise = fc_linear(z, params["fc_w"], params["fc_b"]).reshape(n, m, c)
    img_flat = jnp.transpose(img_nchw, (0, 2, 3, 1)).reshape(n, m, c)

    out = fused_generator(img_flat, noise, params, H=h, W=w,
                          n_blocks=params["n_blocks"])          # [N, H*W, OUT_PAD]

    img_ = out[:, :, :c].reshape(n, h, w, c)
    return jnp.transpose(img_, (0, 3, 1, 2))                    # back to NCHW


# ----------------------------------------------------------------------------
if __name__ == "__main__":
    batch = 2
    channels = 4
    img_size = 16
    latent_dim = 8
    n_residual_blocks = 2

    key = jax.random.PRNGKey(0)
    k_param, k_img, k_z = jax.random.split(key, 3)

    params = init_params(k_param, channels, img_size, latent_dim,
                         n_residual_blocks)
    img = jax.random.normal(k_img, (batch, channels, img_size, img_size),
                            dtype=jnp.float32)   # NCHW, like PyTorch
    z = jax.random.normal(k_z, (batch, latent_dim), dtype=jnp.float32)

    out = jax.block_until_ready(generator_forward(img, z, params))

    assert out.shape == (batch, channels, img_size, img_size), out.shape
    assert bool(jnp.all(jnp.isfinite(out)))
    assert bool(jnp.all(jnp.abs(out) <= 1.0 + 1e-6))  # tanh output range
    print("KERNEL_OK")
</pallas_src>

<mosaic_0001>
module attributes {stable_mosaic.version = 11 : i64} {
  func.func @linear_kernel(%arg0: memref<2x8xf32, #tpu.memory_space<vmem>>, %arg1: memref<8x1024xf32, #tpu.memory_space<vmem>>, %arg2: memref<1x1024xf32, #tpu.memory_space<vmem>>, %arg3: memref<2x1024xf32, #tpu.memory_space<vmem>>) attributes {dimension_semantics = [], scalar_prefetch = 0 : i64, scratch_operands = 0 : i64, tpu.core_type = #tpu.core_type<tc>} {
    %c0 = arith.constant 0 : index
    %c0_0 = arith.constant 0 : index
    %0 = vector.load %arg0[%c0, %c0_0] : memref<2x8xf32, #tpu.memory_space<vmem>>, vector<2x8xf32>
    %c0_1 = arith.constant 0 : index
    %c0_2 = arith.constant 0 : index
    %1 = vector.load %arg1[%c0_1, %c0_2] : memref<8x1024xf32, #tpu.memory_space<vmem>>, vector<8x1024xf32>
    %cst = arith.constant dense<0.000000e+00> : vector<2x1024xf32>
    %2 = tpu.matmul %0, %1, %cst {dimension_numbers = #tpu.dot_dimension_numbers<[1], [0], [0], [1], [0, 0, 1, 1], [], []>} : vector<2x8xf32>, vector<8x1024xf32>, vector<2x1024xf32> -> vector<2x1024xf32>
    %c0_3 = arith.constant 0 : index
    %c0_4 = arith.constant 0 : index
    %3 = vector.load %arg2[%c0_3, %c0_4] : memref<1x1024xf32, #tpu.memory_space<vmem>>, vector<1x1024xf32>
    %4 = vector.broadcast %3 : vector<1x1024xf32> to vector<2x1024xf32>
    %5 = arith.addf %2, %4 : vector<2x1024xf32>
    %c0_5 = arith.constant 0 : index
    %c0_6 = arith.constant 0 : index
    %6 = vector.load %arg3[%c0_5, %c0_6] : memref<2x1024xf32, #tpu.memory_space<vmem>>, vector<2x1024xf32>
    tpu.vector_store %arg3[%c0_5, %c0_6], %5 {strides = array<i32>} : memref<2x1024xf32, #tpu.memory_space<vmem>>, vector<2x1024xf32>,
    return
  }
}

</mosaic_0001>

<bundles_post_ra>
// kernel: tpu_custom_call.1
= control target key start
LH: loop header
LB: loop body
LE: loop exit
PB: predicated region body
PF: predicated region fallthrough
CT: control target
= control target key end

     0   :  { %8 = vsyncpa [#allocation3], 0  ;;  %s456_s0 = inlined_call_operand.hbm [shape: f32[2,8], index: 0, kind: input, shape index: {}]   ;;  %s457_s1 = inlined_call_operand.hbm [shape: f32[8,1024], index: 1, kind: input, shape index: {}]   ;;  %s458_s2 = inlined_call_operand.hbm [shape: f32[1,1024], index: 2, kind: input, shape index: {}]   ;;  %s459_s3 = inlined_call_operand.hbm [shape: f32[2,1024], index: 3, kind: output, shape index: {}]  }
   0x1   :  { %9 = vsyncpa [#allocation6], 0  ;;  %s27_s14 = sshll.u32 %s457_s1, 4  ;;  %s28_s14 = int_to_ptr.hbm [resolvable:$true] %s27_s14 }
   0x2   :  { %10 = vsyncpa [#allocation4], 0  ;;  %s406_s15 = smov [#allocation5]   ;;  %s16_s19 = sshll.u32 %s456_s0, 4  ;;  %s17_s19 = int_to_ptr.hbm [resolvable:$true] %s16_s19 }
   0x3   :  { %s29_s16 = sshll.u32 %s406_s15, 4  ;;  %s407_s20 = smov [#allocation2]   ;;  %s30_s16 = int_to_ptr.vmem [resolvable:$true] %s29_s16 }
   0x4   :  { %32 = dma.hbm_to_vmem [thread:$0]  %s28_s14, 1024, %s30_s16, [#allocation6]  }
   0x5   :  { %s18_s21 = sshll.u32 %s407_s20, 4  ;;  %s38_s24 = sshll.u32 %s458_s2, 4  ;;  %s19_s21 = int_to_ptr.vmem [resolvable:$true] %s18_s21  ;;  %s39_s24 = int_to_ptr.hbm [resolvable:$true] %s38_s24 }
   0x6   :  { %21 = dma.hbm_to_vmem [thread:$0]  %s17_s19, 32, %s19_s21, [#allocation3]  }
   0x7   :  { %s408_s1 = smov [#allocation7]  }
   0x8   :  { %s40_s25 = sshll.u32 %s408_s1, 4  ;;  %s41_s25 = int_to_ptr.vmem [resolvable:$true] %s40_s25 }
   0x9   :  { %43 = dma.hbm_to_vmem [thread:$0]  %s39_s24, 128, %s41_s25, [#allocation6]  }
   0xa   :  { %400 = dma.done.wait [#allocation3], 32  }
   0xb   :  { %401 = vsyncadd [#allocation3], 4294967264 }
   0xc   :  { %402 = dma.done.wait [#allocation6], 1152  }
   0xd   :  { %403 = vsyncadd [#allocation6], 4294966144  ;;  %vm83_vm0 = vcmask 64512   ;;  %v59_v0 = vld [vmem:[#allocation5 + $0x10] sm:$0xff]  ;;  %v60_v1 = vld [vmem:[#allocation5 + $0x18] sm:$0xff]  ;;  %vm261_vm1 = vcmask 1041408  }
   0xe   :  { %v56_v2 = vld [vmem:[#allocation2] sm:$0x3]  ;;  %142 = vmatpush.msra.mxu2 %v59_v0  ;;  %162 = vmatpush.msra.mxu3 %v60_v1  ;;  %v63_v3 = vld [vmem:[#allocation5 + $0x30] sm:$0xff]  ;;  %v58_v5 = vld [vmem:[#allocation5 + $0x8] sm:$0xff]  ;;  %vm263_vm2 = vcmask 1045508   ;;  %vm265_vm3 = vcmask 1043456  }
   0xf   :  { %v64_v4 = vld [vmem:[#allocation5 + $0x38] sm:$0xff]  ;;  %294 = vmatmul.msk.f32.vlgmr.msra.gmra.mxu2 %vm83_vm0, %v56_v2  ;;  %295 = vmatmul.msk.f32.vlgmr.msra.gmra.mxu3 %vm83_vm0, %v56_v2  ;;  %v57_v6 = vld [vmem:[#allocation5] sm:$0xff]  ;;  %v62_v7 = vld [vmem:[#allocation5 + $0x28] sm:$0xff]  ;;  %s409_s0 = smov [#allocation8]   ;;  %s281_s28 = sshll.u32 %s459_s3, 4  ;;  %s282_s28 = int_to_ptr.hbm [resolvable:$true] %s281_s28 }
  0x10   :  { %222 = vmatpush.msrb.mxu2 %v63_v3  ;;  %242 = vmatpush.msrb.mxu3 %v64_v4  ;;  %v61_v8 = vld [vmem:[#allocation5 + $0x20] sm:$0xff]  ;;  %s279_s2 = sshll.u32 %s409_s0, 4  ;;  %s280_s2 = int_to_ptr.vmem [resolvable:$true] %s279_s2 }
  0x11   :  { %122 = vmatpush.msra.mxu1 %v58_v5  ;;  %102 = vmatpush.msra.mxu0 %v57_v6  ;;  %v65_v9 = vld [vmem:[#allocation7] sm:$0xff] }
  0x12   :  { %293 = vmatmul.msk.f32.vlgmr.msra.gmra.mxu1 %vm83_vm0, %v56_v2  ;;  %292 = vmatmul.msk.f32.vlgmr.msra.gmra.mxu0 %vm83_vm0, %v56_v2  ;;  %v68_v10 = vperm.slane %v65_v9, 1  ;;  %v67_v11 = vperm.slane %v65_v9, 0  ;;  %v69_v13 = vperm.slane %v65_v9, 2  ;;  %v70_v14 = vperm.slane %v65_v9, 3 }
  0x13   :  { %202 = vmatpush.msrb.mxu1 %v62_v7  ;;  %182 = vmatpush.msrb.mxu0 %v61_v8  ;;  %v72_v23 = vperm.slane %v65_v9, 5  ;;  %v71_v27 = vperm.slane %v65_v9, 4  ;;  %v73_v30 = vperm.slane %v65_v9, 6  ;;  %v74_v31 = vperm.slane %v65_v9, 7 }
  0x17   :  { %298 = vmatmul.msk.f32.vlgmr.msrb.gmra.mxu2 %vm83_vm0, %v56_v2  ;;  %299 = vmatmul.msk.f32.vlgmr.msrb.gmra.mxu3 %vm83_vm0, %v56_v2 }
  0x1a   :  { %297 = vmatmul.msk.f32.vlgmr.msrb.gmra.mxu1 %vm83_vm0, %v56_v2  ;;  %296 = vmatmul.msk.f32.vlgmr.msrb.gmra.mxu0 %vm83_vm0, %v56_v2 }
  0x8f   :  { %v124_v12 = vpop.f32.mrf.mxu1  ;;  %v104_v15 = vpop.f32.mrf.mxu0 }
  0x90   :  { %v125_v16 = vadd.f32 %v124_v12, %v68_v10  ;;  %v105_v17 = vadd.f32 %v104_v15, %v67_v11 }
  0x92   :  { %v255_v18 = vrot.slane %v125_v16, 6  ;;  %v144_v19 = vpop.f32.mrf.mxu2  ;;  %v164_v20 = vpop.f32.mrf.mxu3 }
  0x93   :  { %v145_v21 = vadd.f32 %v144_v19, %v69_v13  ;;  %v165_v22 = vadd.f32 %v164_v20, %v70_v14 }
  0x94   :  { %v262_v26 = vsel %vm261_vm1, %v105_v17, %v255_v18 }
  0x95   :  { %v256_v24 = vrot.slane %v145_v21, 4  ;;  %v257_v25 = vrot.slane %v165_v22, 2 }
  0x97   :  { %v264_v28 = vsel %vm263_vm2, %v256_v24, %v257_v25  ;;  %v204_v29 = vpop.f32.mrf.mxu1  ;;  %v184_v32 = vpop.f32.mrf.mxu0 }
  0x98   :  { %v205_v33 = vadd.f32 %v204_v29, %v72_v23  ;;  %v266_v34 = vsel %vm265_vm3, %v262_v26, %v264_v28  ;;  %v185_v35 = vadd.f32 %v184_v32, %v71_v27 }
  0x99   :  { %272 = vst [vmem:[#allocation8] sm:$0xff] %v266_v34 }
  0x9a   :  { %v258_v36 = vrot.slane %v205_v33, 6  ;;  %v224_v37 = vpop.f32.mrf.mxu2  ;;  %v244_v38 = vpop.f32.mrf.mxu3 }
  0x9b   :  { %v225_v39 = vadd.f32 %v224_v37, %v73_v30  ;;  %v245_v40 = vadd.f32 %v244_v38, %v74_v31 }
  0x9c   :  { %v267_v43 = vsel %vm261_vm1, %v185_v35, %v258_v36 }
  0x9d   :  { %v259_v41 = vrot.slane %v225_v39, 4  ;;  %v260_v42 = vrot.slane %v245_v40, 2 }
  0x9f   :  { %v268_v44 = vsel %vm263_vm2, %v259_v41, %v260_v42 }
  0xa0   :  { %v269_v45 = vsel %vm265_vm3, %v267_v43, %v268_v44 }
  0xa1   :  { %273 = vst [vmem:[#allocation8 + $0x8] sm:$0xff] %v269_v45 }
  0xa2   :  { %284 = dma.vmem_to_hbm [thread:$0]  %s280_s2, 256, %s282_s28, [#allocation4]  }
  0xa3   :  { %404 = dma.done.wait [#allocation4], 256  }
  0xa4   :  { %405 = vsyncadd [#allocation4], 4294967040 }
  0xa5   :  { %289 = vsyncpa [#allocation3], 1 }
  0xa6   :  { %290 = vsyncpa [#allocation6], 1 }
  0xa7   :  { %291 = vsyncpa [#allocation4], 1 }

</bundles_post_ra>
